<compile_context>
chip_gen: v6e
topology: v6e:2x2x1
jax: 0.10.0
libtpu: 0.0.40
codegen_flags: <defaults>
</compile_context>

<pallas_src>
import functools

import jax
import jax.numpy as jnp
from jax.experimental import pallas as pl
from jax.experimental.pallas import tpu as pltpu

_LANE = 128
_SUBLANE = 8
_MAX_TILE_ROWS = 512


def _kernel(x_ref, w_ref, b_ref, o_ref, *, matmul_dtype):
    # x_ref: (ts, H) input dtype; w_ref: (H, N) matmul dtype, already in
    # (in, out) layout; b_ref: (1, N) f32; o_ref: (ts, N) out dtype.
    #
    # NOTE: when the last row tile is partial, Pallas pads the x block with
    # unspecified data; tanh runs on those garbage rows and the masked
    # writeback drops them.  Do NOT add any reduction over the row tile.
    x = x_ref[...].astype(matmul_dtype)
    y = jnp.dot(x, w_ref[...], preferred_element_type=jnp.float32)   # MXU, f32 acc
    y = y + b_ref[...]                                               # f32 epilogue
    o_ref[...] = jnp.tanh(y).astype(o_ref.dtype)


def _vmem_capacity_bytes():
    try:
        return int(pltpu.get_tpu_info().vmem_capacity_bytes)
    except Exception:                     # pragma: no cover - conservative default
        return 64 * 1024 * 1024           # v7x per-TC physical VMEM


def pack_params(weight, bias, matmul_dtype=jnp.bfloat16):
    """Pack Linear params ONCE at init time.

    weight: [H, H] in PyTorch Linear layout ([out, in]).
    Returns (w_t, b2): weight transposed to (in, out) in the matmul dtype and
    bias reshaped to (1, H) f32.  Reuse across calls (params_packed=True) to
    avoid an extra per-call H^2 HBM transpose/cast pass.
    """
    h = weight.shape[0]
    return weight.T.astype(matmul_dtype), bias.reshape(1, h).astype(jnp.float32)


def _dense_tanh_rows(x2d, w_t, b2, H, out_dtype, matmul_dtype, *,
                     tile_rows, n_tile):
    """tanh(x2d[:, :H] @ w_t + b2) tiled over rows (and optionally out-N)."""
    M, _pitch = x2d.shape                 # block reads only the first H lanes
    x_isz = jnp.dtype(x2d.dtype).itemsize
    o_isz = jnp.dtype(out_dtype).itemsize
    w_isz = jnp.dtype(w_t.dtype).itemsize
    w_bytes = H * H * w_isz

    vmem_cap = _vmem_capacity_bytes()
    # Budget = half of physical VMEM: the resident weight is replicated on
    # each TensorCore under megacore "parallel" splitting (v7x), and the
    # compiler needs scratch headroom.
    budget = vmem_cap // 2

    # Output-N tiling: stream the weight in (H, tn) slabs when keeping the
    # full (H, H) weight resident would eat most of the per-core budget
    # (e.g. H >= 4K bf16 on v7x's 64 MiB VMEM).
    if n_tile is None and w_bytes > budget // 2 and H % 256 == 0:
        n_tile = 512 if H % 512 == 0 else 256
    use_n_tiling = (n_tile is not None and 0 < n_tile < H
                    and H % n_tile == 0 and n_tile % _LANE == 0)
    tn = n_tile if use_n_tiling else H

    x_bufs = 3 if H <= 256 else 2         # extra depth hides short strided DMAs
    w_resident_bufs = 2 if use_n_tiling else 1
    w_resident_bytes = w_resident_bufs * H * tn * w_isz

    if tile_rows is None:
        per_row = x_bufs * H * x_isz + 2 * tn * o_isz
        avail = budget - w_resident_bytes - 2 * tn * 4
        tile_rows = max(_SUBLANE, min(_MAX_TILE_ROWS, avail // max(per_row, 1)))
    ts = min(int(tile_rows), M)
    if ts < M:                            # partial-tile case: keep (8, *) rule
        ts = max(_SUBLANE, (ts // _SUBLANE) * _SUBLANE)

    footprint = (x_bufs * ts * H * x_isz + 2 * ts * tn * o_isz
                 + w_resident_bytes + 2 * tn * 4)
    vmem_limit = int(min(max(footprint + (4 << 20), 16 << 20), vmem_cap))

    kernel = functools.partial(_kernel, matmul_dtype=matmul_dtype)
    ce = pl.CostEstimate(
        flops=2 * M * H * H,
        transcendentals=M * H,
        bytes_accessed=M * H * (x_isz + o_isz) + w_bytes + H * 4,
    )
    grid_rows = pl.cdiv(M, ts)

    def _build_and_run(use_pipeline_modes):
        def spec(shape, index_map, bufs):
            if use_pipeline_modes and bufs != 2:
                return pl.BlockSpec(shape, index_map,
                                    pipeline_mode=pl.Buffered(bufs))
            return pl.BlockSpec(shape, index_map)

        if use_n_tiling:
            grid = (grid_rows, H // tn)
            in_specs = [
                spec((ts, H), lambda i, n: (i, 0), x_bufs),   # x resident over n
                pl.BlockSpec((H, tn), lambda i, n: (0, n)),   # streamed weight
                pl.BlockSpec((1, tn), lambda i, n: (0, n)),
            ]
            out_spec = pl.BlockSpec((ts, tn), lambda i, n: (i, n))
            dims = ("parallel", "arbitrary")
        else:
            grid = (grid_rows,)
            in_specs = [
                spec((ts, H), lambda i: (i, 0), x_bufs),
                spec((H, H), lambda i: (0, 0), 1),            # VMEM-resident, 1 buf
                spec((1, H), lambda i: (0, 0), 1),            # VMEM-resident, 1 buf
            ]
            out_spec = pl.BlockSpec((ts, H), lambda i: (i, 0))
            dims = ("parallel",)

        return pl.pallas_call(
            kernel,
            out_shape=jax.ShapeDtypeStruct((M, H), out_dtype),
            grid_spec=pltpu.PrefetchScalarGridSpec(
                num_scalar_prefetch=0,
                grid=grid,
                in_specs=in_specs,
                out_specs=out_spec,
            ),
            compiler_params=pltpu.CompilerParams(
                dimension_semantics=dims,
                vmem_limit_bytes=vmem_limit),
            cost_estimate=ce,
        )(x2d, w_t, b2)

    try:
        return _build_and_run(True)
    except Exception:
        # Explicit buffer counts (pl.Buffered(1)/(3)) unsupported by this
        # JAX/Mosaic build -> retry with default double buffering.
        return _build_and_run(False)


def big_bird_sentencizer(hidden_states, weight, bias, max_sentence_length, *,
                         matmul_dtype=jnp.bfloat16,
                         out_dtype=None,
                         tile_rows=None,
                         n_tile=None,
                         params_packed=False):
    """BigBirdSentencizer forward.

    hidden_states: [B, S, H]
    weight / bias: either raw PyTorch Linear params ([H, H] in [out, in]
        layout and [H]), or the result of pack_params() if params_packed=True
        (avoids a per-call H^2 transpose/cast pass).
    out_dtype: output dtype; defaults to hidden_states.dtype.  Post-tanh
        values are in [-1, 1], so bf16 output halves write traffic for this
        HBM-bound op.

    Numerics: matmul_dtype=bfloat16 (default) casts x and W to bf16 before the
    MXU (f32 accumulation + f32 bias/tanh epilogue); expect ~1e-2 absolute
    deviation from the f32 PyTorch module.  Pass matmul_dtype=jnp.float32 for
    exact verification.
    """
    B, S, H = hidden_states.shape
    msl = int(max_sentence_length)
    S_sent = -(-S // msl)                 # == len(range(0, S, msl))
    if out_dtype is None:
        out_dtype = hidden_states.dtype

    if params_packed:
        w_t, b2 = weight, bias            # already (in, out) + (1, H) f32
        matmul_dtype = w_t.dtype
    else:
        w_t, b2 = pack_params(weight, bias, matmul_dtype)

    if H % _LANE == 0:
        # Fused path: fold [:, ::msl] into the BlockSpec via a free reshape.
        if S % msl != 0:
            pad = S_sent * msl - S        # <= msl-1 rows; never read by the
            hidden_states = jnp.pad(      # kernel (block covers first H lanes
                hidden_states, ((0, 0), (0, pad), (0, 0)))  # of each sentence row)
        x2d = hidden_states.reshape(B * S_sent, msl * H)    # contiguous view
    else:
        # Tiny / non-lane-aligned H: take the strided slice in XLA, then run
        # the same row-tiled kernel on the contiguous result.
        x2d = hidden_states[:, ::msl].reshape(B * S_sent, H)

    out2d = _dense_tanh_rows(x2d, w_t, b2, H, out_dtype, matmul_dtype,
                             tile_rows=tile_rows, n_tile=n_tile)
    return out2d.reshape(B, S_sent, H)


def reference(hidden_states, weight, bias, max_sentence_length):
    sent = hidden_states[:, ::max_sentence_length]
    y = jnp.einsum("bsh,oh->bso", sent, weight) + bias
    return jnp.tanh(y)


if __name__ == "__main__":
    key = jax.random.PRNGKey(0)
    msl = 4

    # ---- Config A: H multiple of 128 -> fused strided-selection path.
    B, S, H = 2, 16, 128
    k1, k2, k3, k4 = jax.random.split(key, 4)
    hs = jax.random.normal(k1, (B, S, H), dtype=jnp.float32)
    w = jax.random.normal(k2, (H, H), dtype=jnp.float32) * 0.05
    b = jax.random.normal(k3, (H,), dtype=jnp.float32) * 0.05
    ref = reference(hs, w, b, msl)

    out_bf16 = jax.block_until_ready(big_bird_sentencizer(hs, w, b, msl))
    assert out_bf16.shape == (B, S // msl, H)
    assert jnp.allclose(out_bf16, ref, atol=2e-2, rtol=2e-2), "bf16 path mismatch"

    out_f32 = jax.block_until_ready(
        big_bird_sentencizer(hs, w, b, msl, matmul_dtype=jnp.float32))
    assert jnp.allclose(out_f32, ref, atol=1e-5, rtol=1e-5), "f32 path mismatch"

    # Pre-packed params (no per-call transpose/cast) + bf16 output dtype.
    w_p, b_p = pack_params(w, b, matmul_dtype=jnp.float32)
    out_packed = jax.block_until_ready(
        big_bird_sentencizer(hs, w_p, b_p, msl, params_packed=True,
                             out_dtype=jnp.bfloat16))
    assert out_packed.dtype == jnp.bfloat16
    assert jnp.allclose(out_packed.astype(jnp.float32), ref,
                        atol=2e-2, rtol=2e-2), "packed/bf16-out path mismatch"

    # ---- Config B: S not a multiple of msl -> padded fused path (no fallback).
    S_b = 18
    hs_b = jax.random.normal(k4, (B, S_b, H), dtype=jnp.float32)
    ref_b = reference(hs_b, w, b, msl)
    out_b = jax.block_until_ready(
        big_bird_sentencizer(hs_b, w, b, msl, matmul_dtype=jnp.float32))
    assert out_b.shape == ref_b.shape == (B, -(-S_b // msl), H)
    assert jnp.allclose(out_b, ref_b, atol=1e-5, rtol=1e-5), "padded path mismatch"

    # ---- Config C: output-N tiling path (weight streamed in (H, tn) slabs).
    H_c = 256
    kc = jax.random.split(jax.random.PRNGKey(1), 3)
    hs_c = jax.random.normal(kc[0], (B, S, H_c), dtype=jnp.float32)
    w_c = jax.random.normal(kc[1], (H_c, H_c), dtype=jnp.float32) * 0.05
    b_c = jax.random.normal(kc[2], (H_c,), dtype=jnp.float32) * 0.05
    ref_c = reference(hs_c, w_c, b_c, msl)
    out_c = jax.block_until_ready(
        big_bird_sentencizer(hs_c, w_c, b_c, msl, matmul_dtype=jnp.float32,
                             n_tile=128))
    assert jnp.allclose(out_c, ref_c, atol=1e-5, rtol=1e-5), "N-tiled path mismatch"

    # ---- Config D: tiny H (not lane-aligned) -> XLA-slice fallback path.
    H_d = 32
    kd = jax.random.split(jax.random.PRNGKey(2), 3)
    hs_d = jax.random.normal(kd[0], (B, S, H_d), dtype=jnp.float32)
    w_d = jax.random.normal(kd[1], (H_d, H_d), dtype=jnp.float32) * 0.05
    b_d = jax.random.normal(kd[2], (H_d,), dtype=jnp.float32) * 0.05
    ref_d = reference(hs_d, w_d, b_d, msl)
    out_d = jax.block_until_ready(
        big_bird_sentencizer(hs_d, w_d, b_d, msl, matmul_dtype=jnp.float32))
    assert out_d.shape == (B, S // msl, H_d)
    assert jnp.allclose(out_d, ref_d, atol=1e-5, rtol=1e-5), "fallback path mismatch"

    print("KERNEL_OK")
</pallas_src>

<mosaic_0001>
module attributes {stable_mosaic.version = 11 : i64} {
  func.func @_kernel(%arg0: i32, %arg1: memref<8x128xf32, #tpu.memory_space<vmem>>, %arg2: memref<128x128xbf16, #tpu.memory_space<vmem>>, %arg3: memref<1x128xf32, #tpu.memory_space<vmem>>, %arg4: memref<8x128xf32, #tpu.memory_space<vmem>>) attributes {dimension_semantics = [#tpu.dimension_semantics<parallel>], iteration_bounds = array<i64: 1>, scalar_prefetch = 0 : i64, scratch_operands = 0 : i64, tpu.core_type = #tpu.core_type<tc>, window_params = [{transform_indices = @transform_0, window_bounds = array<i64: 8, 128>}, {pipeline_mode = #tpu.pipeline_mode<synchronous>, transform_indices = @transform_1, window_bounds = array<i64: 128, 128>}, {pipeline_mode = #tpu.pipeline_mode<synchronous>, transform_indices = @transform_2, window_bounds = array<i64: 1, 128>}, {transform_indices = @transform_3, window_bounds = array<i64: 8, 128>}]} {
    %c0 = arith.constant 0 : index
    %c0_0 = arith.constant 0 : index
    %0 = vector.load %arg1[%c0, %c0_0] : memref<8x128xf32, #tpu.memory_space<vmem>>, vector<8x128xf32>
    %1 = arith.truncf %0 : vector<8x128xf32> to vector<8x128xbf16>
    %c0_1 = arith.constant 0 : index
    %c0_2 = arith.constant 0 : index
    %2 = vector.load %arg2[%c0_1, %c0_2] : memref<128x128xbf16, #tpu.memory_space<vmem>>, vector<128x128xbf16>
    %cst = arith.constant dense<0.000000e+00> : vector<8x128xf32>
    %3 = tpu.matmul %1, %2, %cst {dimension_numbers = #tpu.dot_dimension_numbers<[1], [0], [0], [1], [0, 0, 1, 1], [], []>} : vector<8x128xbf16>, vector<128x128xbf16>, vector<8x128xf32> -> vector<8x128xf32>
    %c0_3 = arith.constant 0 : index
    %c0_4 = arith.constant 0 : index
    %4 = vector.load %arg3[%c0_3, %c0_4] : memref<1x128xf32, #tpu.memory_space<vmem>>, vector<1x128xf32>
    %5 = vector.broadcast %4 : vector<1x128xf32> to vector<8x128xf32>
    %6 = arith.addf %3, %5 : vector<8x128xf32>
    %7 = math.tanh %6 : vector<8x128xf32>
    %c0_5 = arith.constant 0 : index
    %c0_6 = arith.constant 0 : index
    %8 = vector.load %arg4[%c0_5, %c0_6] : memref<8x128xf32, #tpu.memory_space<vmem>>, vector<8x128xf32>
    tpu.vector_store %arg4[%c0_5, %c0_6], %7 {strides = array<i32>} : memref<8x128xf32, #tpu.memory_space<vmem>>, vector<8x128xf32>,
    return
  }
  func.func @transform_0(%arg0: i32) -> (i32, i32) {
    %c0_i32 = arith.constant 0 : i32
    %c0_i32_0 = arith.constant 0 : i32
    return %arg0, %c0_i32 : i32, i32
  }
  func.func @transform_1(%arg0: i32) -> (i32, i32) {
    %c0_i32 = arith.constant 0 : i32
    %c0_i32_0 = arith.constant 0 : i32
    %c0_i32_1 = arith.constant 0 : i32
    return %c0_i32, %c0_i32_0 : i32, i32
  }
  func.func @transform_2(%arg0: i32) -> (i32, i32) {
    %c0_i32 = arith.constant 0 : i32
    %c0_i32_0 = arith.constant 0 : i32
    %c0_i32_1 = arith.constant 0 : i32
    return %c0_i32, %c0_i32_0 : i32, i32
  }
  func.func @transform_3(%arg0: i32) -> (i32, i32) {
    %c0_i32 = arith.constant 0 : i32
    %c0_i32_0 = arith.constant 0 : i32
    return %arg0, %c0_i32 : i32, i32
  }
}

</mosaic_0001>

<bundles_post_ra>
// kernel: tpu_custom_call.1
= control target key start
LH: loop header
LB: loop body
LE: loop exit
PB: predicated region body
PF: predicated region fallthrough
CT: control target
= control target key end

     0   :  { %8 = vsyncpa [#allocation3], 0  ;;  %s333_s0 = inlined_call_operand.hbm [shape: f32[8,512], index: 0, kind: input, shape index: {}]   ;;  %s334_s1 = inlined_call_operand.hbm [shape: bf16[128,128], index: 1, kind: input, shape index: {}]   ;;  %s335_s2 = inlined_call_operand.vmem [shape: f32[1,128], index: 2, kind: input, shape index: {}]   ;;  %s336_s3 = inlined_call_operand.hbm [shape: f32[8,128], index: 3, kind: output, shape index: {}]  }
   0x1   :  { %9 = vsyncpa [#allocation6], 0 }
   0x2   :  { %10 = vsyncpa [#allocation4], 0  ;;  %s294_s12 = smov [#allocation2]   ;;  %s295_s14 = smov [#allocation5]  }
   0x3   :  { %s17_s13 = sshll.u32 %s294_s12, 4  ;;  %s26_s15 = sshll.u32 %s295_s14, 4  ;;  %s18_s13 = int_to_ptr.vmem [resolvable:$true] %s17_s13  ;;  %s27_s15 = int_to_ptr.vmem [resolvable:$true] %s26_s15 }
   0x4   :  { %s236_s16 = scalar_lea.vmem %s18_s13, 128  ;;  %p241_p1 = scmp.lt.s32.totalorder %s18_s13, %s18_s13 }
   0x5   :  { %p237_p0 = scmp.ne.s32.totalorder %s18_s13, %s236_s16  ;;  %p242_p2 = scmp.lt.s32.totalorder %s236_s16, %s236_s16 }
   0x7   :  { %p243_p3 = por %p242_p2, %p241_p1 }
   0x9   :  { %p244_p4 = pnand %p243_p3, %p237_p0 }
   0xb   :  { %247 = shalt.err (!%p244_p4)
}
   0xc   :  { %20 = dma.hbm_to_vmem [thread:$0]  %s333_s0, 128, %s18_s13, [#allocation3]  }
   0xd   :  { %s256_s19 = scalar_lea.vmem %s27_s15, 1024  ;;  %p261_p6 = scmp.lt.s32.totalorder %s27_s15, %s27_s15 }
   0xe   :  { %p257_p5 = scmp.ne.s32.totalorder %s27_s15, %s256_s19  ;;  %p262_p7 = scmp.lt.s32.totalorder %s256_s19, %s256_s19 }
  0x10   :  { %p263_p8 = por %p262_p7, %p261_p6 }
  0x12   :  { %p264_p9 = pnand %p263_p8, %p257_p5 }
  0x14   :  { %267 = shalt.err (!%p264_p9)
}
  0x15   :  { %s296_s20 = smov 64   ;;  %s297_s21 = smov 4  }
  0x16   :  { %32 = dma.hbm_to_vmem [thread:$0]  %s334_s1, 1024, %s27_s15, [#allocation6], %s296_s20, %s296_s20, %s297_s21  }
  0x17   :  { %288 = dma.done.wait [#allocation3], 128  }
  0x18   :  { %289 = vsyncadd [#allocation3], 4294967168 }
  0x19   :  { %290 = dma.done.wait [#allocation6], 1024  }
  0x1a   :  { %291 = vsyncadd [#allocation6], 4294966272  ;;  %v298_v0 = vmov 0.0   ;;  %vm299_vm0 = vmmov 0   ;;  %v218_v1 = vld [vmem:[#allocation5 + $0x38] sm:$0xff]   ;;  %v219_v2 = vld [vmem:[#allocation5 + $0x30] sm:$0xff]  }
  0x1b   :  { %191 = vmatprep.subr.bf16.mxu0 %v298_v0  ;;  %207 = vmatprep.mubr.msk.bf16.mxu0 %vm299_vm0, %v298_v0  ;;  %v220_v3 = vld [vmem:[#allocation5 + $0x28] sm:$0xff]   ;;  %v221_v4 = vld [vmem:[#allocation5 + $0x20] sm:$0xff]   ;;  %v222_v5 = vld [vmem:[#allocation5 + $0x18] sm:$0xff]   ;;  %s300_s24 = smov [#allocation7]  }
  0x1c   :  { %192 = vmatpush3.bf16.msra.mxu0 %v218_v1  ;;  %v223_v6 = vld [vmem:[#allocation5 + $0x10] sm:$0xff]   ;;  %v224_v7 = vld [vmem:[#allocation5 + $0x8] sm:$0xff]   ;;  %v225_v8 = vld [vmem:[#allocation5] sm:$0xff]   ;;  %s163_s25 = sshll.u32 %s300_s24, 4  ;;  %s164_s25 = int_to_ptr.vmem [resolvable:$true] %s163_s25 }
  0x1d   :  { %193 = vmatprep.subr.bf16.mxu0 %v298_v0  ;;  %v42_v9 = vld [vmem:[#allocation2] sm:$0xff]  ;;  %s268_s26 = scalar_lea.vmem %s164_s25, 128  ;;  %p273_p11 = scmp.lt.s32.totalorder %s164_s25, %s164_s25 }
  0x1e   :  { %v43_v10 = vpack.c.bf16 %v42_v9, %v42_v9  ;;  %v173_v11 = vld [vmem:[%s335_s2] ss:$0 sm:$0xff]  ;;  %p269_p10 = scmp.ne.s32.totalorder %s164_s25, %s268_s26  ;;  %p274_p12 = scmp.lt.s32.totalorder %s268_s26, %s268_s26 }
  0x20   :  { %194 = vmatpush3.bf16.msra.mxu0 %v219_v2  ;;  %p275_p13 = por %p274_p12, %p273_p11 }
  0x21   :  { %195 = vmatprep.subr.bf16.mxu0 %v298_v0 }
  0x22   :  { %p276_p0 = pnand %p275_p13, %p269_p10 }
  0x24   :  { %196 = vmatpush3.bf16.msra.mxu0 %v220_v3 }
  0x25   :  { %197 = vmatprep.subr.bf16.mxu0 %v298_v0 }
  0x28   :  { %198 = vmatpush3.bf16.msra.mxu0 %v221_v4 }
  0x29   :  { %199 = vmatprep.subr.bf16.mxu0 %v298_v0 }
  0x2c   :  { %200 = vmatpush3.bf16.msra.mxu0 %v222_v5 }
  0x2d   :  { %201 = vmatprep.subr.bf16.mxu0 %v298_v0 }
  0x30   :  { %202 = vmatpush3.bf16.msra.mxu0 %v223_v6 }
  0x31   :  { %203 = vmatprep.subr.bf16.mxu0 %v298_v0 }
  0x34   :  { %204 = vmatpush3.bf16.msra.mxu0 %v224_v7 }
  0x35   :  { %205 = vmatprep.subr.bf16.mxu0 %v298_v0 }
  0x38   :  { %206 = vmatpush3.bf16.msra.mxu0 %v225_v8 }
  0x3b   :  { %208 = vmatmul.mubr.bf16.vlgmr.msra.gmra.mxu0 %v43_v10 }
  0xfb   :  { %v149_v12 = vpop.f32.mrf.mxu0 }
  0xfc   :  { %v150_v13 = vadd.f32 %v173_v11, %v149_v12 }
  0xfd   :  { %v209_v14 = vpop.f32.mrf.mxu0 }
  0xfe   :  { %226 = vtanh.f32 %v150_v13 }
  0xff   :  { %v152_v15 = vpop.f32.mrf.mxu0 }
 0x101   :  { %v210_v16 = vpop.f32.mrf.mxu0 }
 0x10b   :  { %v227_v17 = vpop.eup %226 }
 0x10c   :  { %156 = vst [vmem:[#allocation7] sm:$0xff] %v227_v17 }
 0x10d   :  { %279 = shalt.err (!%p276_p0)
}
 0x10e   :  { %166 = dma.vmem_to_hbm [thread:$0]  %s164_s25, 128, %s336_s3, [#allocation4]  }
 0x10f   :  { %292 = dma.done.wait [#allocation4], 128  }
 0x110   :  { %293 = vsyncadd [#allocation4], 4294967168 }
 0x111   :  { %170 = vsyncpa [#allocation3], 1 }
 0x112   :  { %171 = vsyncpa [#allocation6], 1 }
 0x113   :  { %172 = vsyncpa [#allocation4], 1 }

</bundles_post_ra>
